<compile_context>
chip_gen: v7x
topology: tpu7x:2x2x1
jax: 0.10.0
libtpu: 0.0.40
codegen_flags: <defaults>
</compile_context>

<pallas_src>
import jax
import jax.numpy as jnp
from jax.experimental import pallas as pl
from jax.experimental.pallas import tpu as pltpu  # noqa: F401  (kept for TPU-specific extensions)


def _sdp_dropout_kernel(x1_ref, x2_ref, keep_ref, o_ref):
    x1 = x1_ref[...]      # (B, S, D)  f32
    x2 = x2_ref[...]      # (B, S, Np) f32 (lane-padded)
    keep = keep_ref[...]  # (B, S, S)  f32, values in {0, 1/(1-p)}

    # scores = (x1 @ x1^T) * 0.5, batched, contracting last dims (no transpose)
    s = jnp.einsum("bqd,bkd->bqk", x1, x1,
                   preferred_element_type=jnp.float32) * 0.5          # (B, S, S)

    # numerically-stable softmax along the last axis
    m = jnp.max(s, axis=-1, keepdims=True)
    e = jnp.exp(s - m)
    p = e / jnp.sum(e, axis=-1, keepdims=True)

    # dropout: pre-scaled keep mask (0 or 1/(1-p))
    p = p * keep

    # out = dropped @ x2
    out = jnp.einsum("bqk,bkn->bqn", p, x2,
                     preferred_element_type=jnp.float32)               # (B, S, Np)
    o_ref[...] = out.astype(o_ref.dtype)


def sdp_softmax_dropout_matmul(x1, x2, dropout_key=None, p_drop=0.5):
    """x1: (B, S, D), x2: (B, S, N) -> (B, S, N).

    If dropout_key is None, runs in eval mode (no dropout)."""
    B, S, D = x1.shape
    B2, S2, N = x2.shape
    assert B == B2 and S == S2, "x2 middle dim must match x1 seq dim"

    # Dropout keep-mask, generated in the wrapper (portable; better RNG statistics
    # than in-kernel bit-0 of the HW PRNG), pre-scaled by 1/(1-p).
    if dropout_key is None or p_drop == 0.0:
        mask = jnp.ones((B, S, S), dtype=jnp.float32)
    else:
        keep = jax.random.bernoulli(dropout_key, 1.0 - p_drop, (B, S, S))
        mask = keep.astype(jnp.float32) * (1.0 / (1.0 - p_drop))

    # Lane-dense output: pad the last dim up to a multiple of 128.
    n_pad = ((N + 127) // 128) * 128
    x2_p = x2 if n_pad == N else jnp.pad(x2, ((0, 0), (0, 0), (0, n_pad - N)))

    cost = pl.CostEstimate(
        flops=2 * B * S * S * D + 2 * B * S * S * n_pad,
        transcendentals=B * S * S,
        bytes_accessed=4 * (B * S * D + B * S * n_pad + B * S * S + B * S * n_pad),
    )

    out = pl.pallas_call(
        _sdp_dropout_kernel,
        out_shape=jax.ShapeDtypeStruct((B, S, n_pad), jnp.float32),
        cost_estimate=cost,
    )(x1, x2_p, mask)

    return out[..., :N]


if __name__ == "__main__":
    key = jax.random.PRNGKey(0)
    k1, k2, kd = jax.random.split(key, 3)
    # shapes implied by the forward pass (see header comment)
    x1 = jax.random.normal(k1, (2, 4, 5), dtype=jnp.float32)
    x2 = jax.random.normal(k2, (2, 4, 6), dtype=jnp.float32)

    out = sdp_softmax_dropout_matmul(x1, x2, dropout_key=kd, p_drop=0.5)
    jax.block_until_ready(out)
    assert out.shape == (2, 4, 6)

    # Reference (same dropout mask) — loose tolerance for MXU vs XLA matmul paths.
    keep_ref = jax.random.bernoulli(kd, 0.5, (2, 4, 4)).astype(jnp.float32) * 2.0
    s_ref = jnp.einsum("bqd,bkd->bqk", x1, x1,
                       precision=jax.lax.Precision.HIGHEST) * 0.5
    p_ref = jax.nn.softmax(s_ref, axis=-1) * keep_ref
    ref = jnp.einsum("bqk,bkn->bqn", p_ref, x2,
                     precision=jax.lax.Precision.HIGHEST)
    assert jnp.allclose(out, ref, atol=2e-2, rtol=2e-2), float(
        jnp.max(jnp.abs(out - ref)))

    print("KERNEL_OK")
</pallas_src>

<mosaic_0001>
module attributes {stable_mosaic.version = 11 : i64} {
  func.func @_sdp_dropout_kernel(%arg0: memref<2x4x5xf32, #tpu.memory_space<vmem>>, %arg1: memref<2x4x128xf32, #tpu.memory_space<vmem>>, %arg2: memref<2x4x4xf32, #tpu.memory_space<vmem>>, %arg3: memref<2x4x128xf32, #tpu.memory_space<vmem>>) attributes {dimension_semantics = [], scalar_prefetch = 0 : i64, scratch_operands = 0 : i64, tpu.core_type = #tpu.core_type<tc>} {
    %c0 = arith.constant 0 : index
    %c0_0 = arith.constant 0 : index
    %c0_1 = arith.constant 0 : index
    %0 = vector.load %arg0[%c0, %c0_0, %c0_1] : memref<2x4x5xf32, #tpu.memory_space<vmem>>, vector<2x4x5xf32>
    %c0_2 = arith.constant 0 : index
    %c0_3 = arith.constant 0 : index
    %c0_4 = arith.constant 0 : index
    %1 = vector.load %arg1[%c0_2, %c0_3, %c0_4] : memref<2x4x128xf32, #tpu.memory_space<vmem>>, vector<2x4x128xf32>
    %c0_5 = arith.constant 0 : index
    %c0_6 = arith.constant 0 : index
    %c0_7 = arith.constant 0 : index
    %2 = vector.load %arg2[%c0_5, %c0_6, %c0_7] : memref<2x4x4xf32, #tpu.memory_space<vmem>>, vector<2x4x4xf32>
    "tpu.trace_start"() <{level = 10 : i32, message = "bqd,bkd->bqk"}> : () -> ()
    %cst = arith.constant dense<0.000000e+00> : vector<2x4x4xf32>
    %3 = tpu.matmul %0, %0, %cst {dimension_numbers = #tpu.dot_dimension_numbers<[2], [2], [1], [1], [0, 0, 0, 1, 1, 1], [0], [0]>} : vector<2x4x5xf32>, vector<2x4x5xf32>, vector<2x4x4xf32> -> vector<2x4x4xf32>
    "tpu.trace_stop"() : () -> ()
    %cst_8 = arith.constant 5.000000e-01 : f32
    %4 = vector.broadcast %cst_8 : f32 to vector<2x4x4xf32>
    %5 = arith.mulf %3, %4 : vector<2x4x4xf32>
    %cst_9 = arith.constant dense<0xFF800000> : vector<2x4xf32>
    %6 = vector.multi_reduction <maximumf>, %5, %cst_9 [2] : vector<2x4x4xf32> to vector<2x4xf32>
    %7 = vector.shape_cast %6 : vector<2x4xf32> to vector<2x4x1xf32>
    %8 = vector.broadcast %7 : vector<2x4x1xf32> to vector<2x4x4xf32>
    %9 = arith.subf %5, %8 : vector<2x4x4xf32>
    %10 = math.exp %9 : vector<2x4x4xf32>
    %cst_10 = arith.constant dense<0.000000e+00> : vector<2x4xf32>
    %11 = vector.multi_reduction <add>, %10, %cst_10 [2] : vector<2x4x4xf32> to vector<2x4xf32>
    %12 = vector.shape_cast %11 : vector<2x4xf32> to vector<2x4x1xf32>
    %13 = vector.broadcast %12 : vector<2x4x1xf32> to vector<2x4x4xf32>
    %14 = arith.divf %10, %13 : vector<2x4x4xf32>
    %15 = arith.mulf %14, %2 : vector<2x4x4xf32>
    "tpu.trace_start"() <{level = 10 : i32, message = "bqk,bkn->bqn"}> : () -> ()
    %cst_11 = arith.constant dense<0.000000e+00> : vector<2x4x128xf32>
    %16 = tpu.matmul %15, %1, %cst_11 {dimension_numbers = #tpu.dot_dimension_numbers<[2], [1], [1], [2], [0, 0, 0, 1, 1, 2], [0], [0]>} : vector<2x4x4xf32>, vector<2x4x128xf32>, vector<2x4x128xf32> -> vector<2x4x128xf32>
    "tpu.trace_stop"() : () -> ()
    %c0_12 = arith.constant 0 : index
    %c0_13 = arith.constant 0 : index
    %c0_14 = arith.constant 0 : index
    %17 = vector.load %arg3[%c0_12, %c0_13, %c0_14] : memref<2x4x128xf32, #tpu.memory_space<vmem>>, vector<2x4x128xf32>
    tpu.vector_store %arg3[%c0_12, %c0_13, %c0_14], %16 {strides = array<i32>} : memref<2x4x128xf32, #tpu.memory_space<vmem>>, vector<2x4x128xf32>,
    return
  }
}

</mosaic_0001>

<bundles_post_ra>
// kernel: tpu_custom_call.1
= control target key start
LH: loop header
LB: loop body
LE: loop exit
PB: predicated region body
PF: predicated region fallthrough
CT: control target
= control target key end

     0   :  { %8 = vsyncpa [#allocation3], 0  ;;  %s655_s0 = inlined_call_operand.hbm [shape: f32[2,4,5], index: 0, kind: input, shape index: {}]   ;;  %s656_s1 = inlined_call_operand.hbm [shape: f32[2,4,128], index: 1, kind: input, shape index: {}]   ;;  %s657_s2 = inlined_call_operand.hbm [shape: f32[2,4,4], index: 2, kind: input, shape index: {}]   ;;  %s658_s3 = inlined_call_operand.hbm [shape: f32[2,4,128], index: 3, kind: output, shape index: {}]  }
   0x1   :  { %9 = vsyncpa [#allocation6], 0 }
   0x2   :  { %10 = vsyncpa [#allocation4], 0  ;;  %s556_s12 = smov [#allocation5]   ;;  %s557_s14 = smov [#allocation2]  }
   0x3   :  { %s28_s13 = sshll.u32 %s556_s12, 4  ;;  %s16_s15 = sshll.u32 %s557_s14, 4  ;;  %s29_s13 = int_to_ptr.vmem [resolvable:$true] %s28_s13  ;;  %s584_s15 = int_to_ptr.vmem [resolvable:$true] %s16_s15 }
   0x4   :  { %s462_s18 = scalar_lea.hbm %s656_s1, 128 }
   0x5   :  { %p463_p0 = scmp.ne.s32.totalorder %s656_s1, %s462_s18  ;;  %p466_p1 = scmp.lt.u32.totalorder %s462_s18, %s656_s1 }
   0x7   :  { %p468_p2 = pnand %p466_p1, %p463_p0 }
   0x9   :  { %471 = shalt.err (!%p468_p2)
}
   0xa   :  { %s472_s23 = scalar_lea.vmem %s29_s13, 128  ;;  %p477_p4 = scmp.lt.s32.totalorder %s29_s13, %s29_s13 }
   0xb   :  { %p473_p3 = scmp.ne.s32.totalorder %s29_s13, %s472_s23  ;;  %p478_p5 = scmp.lt.s32.totalorder %s472_s23, %s472_s23 }
   0xd   :  { %p479_p6 = por %p478_p5, %p477_p4 }
   0xf   :  { %p480_p7 = pnand %p479_p6, %p473_p3 }
  0x11   :  { %483 = shalt.err (!%p480_p7)
}
  0x12   :  { %s558_s24 = smov 64   ;;  %s559_s25 = smov 4  }
  0x13   :  { %34 = dma.hbm_to_vmem [thread:$0]  %s656_s1, 128, %s29_s13, [#allocation6], %s558_s24, %s558_s24, %s559_s25  }
  0x14   :  { %s484_s30 = scalar_lea.hbm %s655_s0, 128 }
  0x15   :  { %p485_p8 = scmp.ne.s32.totalorder %s655_s0, %s484_s30  ;;  %p488_p9 = scmp.lt.u32.totalorder %s484_s30, %s655_s0 }
  0x17   :  { %p490_p10 = pnand %p488_p9, %p485_p8 }
  0x19   :  { %493 = shalt.err (!%p490_p10)
}
  0x1a   :  { %s494_s8 = scalar_lea.vmem %s584_s15, 128  ;;  %p499_p12 = scmp.lt.s32.totalorder %s584_s15, %s584_s15 }
  0x1b   :  { %p495_p11 = scmp.ne.s32.totalorder %s584_s15, %s494_s8  ;;  %p500_p13 = scmp.lt.s32.totalorder %s494_s8, %s494_s8 }
  0x1d   :  { %p501_p0 = por %p500_p13, %p499_p12 }
  0x1f   :  { %p502_p1 = pnand %p501_p0, %p495_p11 }
  0x21   :  { %505 = shalt.err (!%p502_p1)
}
  0x22   :  { %22 = dma.hbm_to_vmem [thread:$0]  %s655_s0, 128, %s584_s15, [#allocation3], %s558_s24, %s558_s24, %s559_s25  }
  0x23   :  { %s560_s10 = smov [#allocation7]   ;;  %s506_s14 = scalar_lea.hbm %s657_s2, 128 }
  0x24   :  { %s40_s11 = sshll.u32 %s560_s10, 4  ;;  %p507_p2 = scmp.ne.s32.totalorder %s657_s2, %s506_s14  ;;  %s41_s11 = int_to_ptr.vmem [resolvable:$true] %s40_s11 }
  0x25   :  { %p510_p3 = scmp.lt.u32.totalorder %s506_s14, %s657_s2 }
  0x27   :  { %p512_p4 = pnand %p510_p3, %p507_p2 }
  0x29   :  { %515 = shalt.err (!%p512_p4)
}
  0x2a   :  { %s516_s20 = scalar_lea.vmem %s41_s11, 128  ;;  %p521_p6 = scmp.lt.s32.totalorder %s41_s11, %s41_s11 }
  0x2b   :  { %p517_p5 = scmp.ne.s32.totalorder %s41_s11, %s516_s20  ;;  %p522_p7 = scmp.lt.s32.totalorder %s516_s20, %s516_s20 }
  0x2d   :  { %p523_p8 = por %p522_p7, %p521_p6 }
  0x2f   :  { %p524_p9 = pnand %p523_p8, %p517_p5 }
  0x31   :  { %527 = shalt.err (!%p524_p9)
}
  0x32   :  { %46 = dma.hbm_to_vmem [thread:$0]  %s657_s2, 128, %s41_s11, [#allocation6], %s558_s24, %s558_s24, %s559_s25  }
  0x33   :  { %550 = dma.done.wait [#allocation3], 128  }
  0x34   :  { %551 = vsyncadd [#allocation3], 4294967168 }
  0x35   :  { %552 = dma.done.wait [#allocation6], 256  }
  0x36   :  { %553 = vsyncadd [#allocation6], 4294967040  ;;  %v561_v0 = vmov 0.0   ;;  %vm562_vm0 = vmmov 0   ;;  %vm62_vm1 = vcmask 39936   ;;  %vm211_vm2 = vcmask 27648  }
  0x37   :  { %426 = vmatprep.subr.mxu0 %v561_v0  ;;  %428 = vmatprep.mubr.msk.f32.mxu0 %vm562_vm0, %v561_v0  ;;  %v56_v1 = vld [vmem:[#allocation2] sm:$0xf]  ;;  %v57_v2 = vld [vmem:[#allocation2 + $0x4] sm:$0xf]  ;;  %v58_v21 = vld [vmem:[#allocation5] sm:$0xf] }
  0x38   :  { %431 = vmatprep.subr.mxu1 %v561_v0  ;;  %433 = vmatprep.mubr.msk.f32.mxu1 %vm562_vm0, %v561_v0  ;;  %vm240_vm3 = vcmask 1043456   ;;  %v59_v22 = vld [vmem:[#allocation5 + $0x4] sm:$0xf]  ;;  %v60_v26 = vld [vmem:[#allocation7] sm:$0xf]  ;;  %vm236_vm4 = vcmask 31744  }
  0x39   :  { %427 = vmatpush3.xpose.msk.msra.mxu0 %vm62_vm1, %v56_v1  ;;  %432 = vmatpush3.xpose.msk.msra.mxu1 %vm62_vm1, %v57_v2  ;;  %v61_v30 = vld [vmem:[#allocation7 + $0x4] sm:$0xf]  ;;  %s563_s2 = smov [#allocation8]  }
  0x3a   :  { %436 = vmatprep.subr.mxu0 %v561_v0  ;;  %441 = vmatprep.subr.mxu1 %v561_v0  ;;  %s397_s21 = sshll.u32 %s563_s2, 4  ;;  %s398_s21 = int_to_ptr.vmem [resolvable:$true] %s397_s21 }
  0x3b   :  { %s528_s22 = scalar_lea.vmem %s398_s21, 128  ;;  %p533_p11 = scmp.lt.s32.totalorder %s398_s21, %s398_s21 }
  0x3c   :  { %429 = vmatmul.mubr.msk.f32.vlgmr.msra.gmra.mrb[0].mxu0 %vm62_vm1, %v56_v1  ;;  %434 = vmatmul.mubr.msk.f32.vlgmr.msra.gmra.mrb[0].mxu1 %vm62_vm1, %v57_v2  ;;  %p529_p10 = scmp.ne.s32.totalorder %s398_s21, %s528_s22  ;;  %p534_p12 = scmp.lt.s32.totalorder %s528_s22, %s528_s22 }
  0x3d   :  { %438 = vmatprep.mubr.msk.f32.mxu0 %vm562_vm0, %v561_v0  ;;  %443 = vmatprep.mubr.msk.f32.mxu1 %vm562_vm0, %v561_v0 }
  0x3e   :  { %437 = vmatpush3.msk.msra.mxu0 %vm240_vm3, %v58_v21  ;;  %442 = vmatpush3.msk.msra.mxu1 %vm240_vm3, %v59_v22  ;;  %p535_p13 = por %p534_p12, %p533_p11 }
  0x40   :  { %p536_p0 = pnand %p535_p13, %p529_p10 }
 0x10f   :  { %v132_v3 = vpop.f32.mrb[0].mxu0  ;;  %v205_v4 = vpop.f32.mrb[0].mxu1 }
 0x110   :  { %v209_v5 = vmul.f32 0.5, %v132_v3  ;;  %v430_v6 = vpop.f32.mrb[1].mxu0  ;;  %v210_v7 = vmul.f32 0.5, %v205_v4  ;;  %v435_v8 = vpop.f32.mrb[1].mxu1 }
 0x112   :  { %v212_v9 = vsel %vm211_vm2, %v209_v5, -inf  ;;  %v215_v10 = vsel %vm211_vm2, %v210_v7, -inf }
 0x113   :  { %213 = vmax.xlane.f32.xlu0 %v212_v9 }
 0x117   :  { %216 = vmax.xlane.f32.xlu0 %v215_v10 }
 0x1a0   :  { %v214_v11 = vpop.xlane.xlu0 %213 }
 0x1a1   :  { %v218_v12 = vsub.f32 %v209_v5, %v214_v11 }
 0x1a3   :  { %v220_v13 = vmul.f32 1.442695, %v218_v12 }
 0x1a4   :  { %v217_v14 = vpop.xlane.xlu0 %216 }
 0x1a5   :  { %454 = vpow2.f32 %v220_v13  ;;  %v219_v15 = vsub.f32 %v210_v7, %v217_v14 }
 0x1a7   :  { %v222_v16 = vmul.f32 1.442695, %v219_v15 }
 0x1a9   :  { %456 = vpow2.f32 %v222_v16 }
 0x1af   :  { %v455_v17 = vpop.eup %454 }
 0x1b0   :  { %v224_v18 = vsel %vm211_vm2, %v455_v17, 0.0 }
 0x1b1   :  { %225 = vadd.xlane.f32.xlu1 %v224_v18 }
 0x1b3   :  { %v457_v19 = vpop.eup %456 }
 0x1b4   :  { %v227_v20 = vsel %vm211_vm2, %v457_v19, 0.0 }
 0x1b5   :  { %228 = vadd.xlane.f32.xlu1 %v227_v20 }
 0x23e   :  { %v226_v23 = vpop.xlane.xlu1 %225 }
 0x23f   :  { %458 = vrcp.f32 %v226_v23 }
 0x242   :  { %v229_v24 = vpop.xlane.xlu1 %228 }
 0x243   :  { %460 = vrcp.f32 %v229_v24 }
 0x249   :  { %v459_v25 = vpop.eup %458 }
 0x24a   :  { %v231_v27 = vmul.f32 %v459_v25, %v455_v17 }
 0x24c   :  { %v234_v28 = vmul.f32 %v231_v27, %v60_v26 }
 0x24d   :  { %v461_v29 = vpop.eup %460 }
 0x24e   :  { %v233_v31 = vmul.f32 %v461_v29, %v457_v19  ;;  %439 = vmatmul.mubr.msk.f32.vlgmr.msra.gmra.mrb[2].mxu0 %vm236_vm4, %v234_v28 }
 0x250   :  { %v235_v32 = vmul.f32 %v233_v31, %v61_v30 }
 0x252   :  { %444 = vmatmul.mubr.msk.f32.vlgmr.msra.gmra.mrb[2].mxu1 %vm236_vm4, %v235_v32 }
 0x321   :  { %v310_v33 = vpop.f32.mrb[2].mxu0 }
 0x322   :  { %390 = vst [vmem:[#allocation8] sm:$0xf] %v310_v33  ;;  %v440_v34 = vpop.f32.mrb[3].mxu0 }
 0x325   :  { %v386_v35 = vpop.f32.mrb[2].mxu1 }
 0x326   :  { %391 = vst [vmem:[#allocation8 + $0x4] sm:$0xf] %v386_v35  ;;  %v445_v36 = vpop.f32.mrb[3].mxu1 }
 0x327   :  { %539 = shalt.err (!%p536_p0)
}
 0x328   :  { %s540_s27 = scalar_lea.hbm %s658_s3, 128 }
 0x329   :  { %p541_p1 = scmp.ne.s32.totalorder %s658_s3, %s540_s27  ;;  %p544_p2 = scmp.lt.u32.totalorder %s540_s27, %s658_s3 }
 0x32b   :  { %p546_p3 = pnand %p544_p2, %p541_p1 }
 0x32d   :  { %549 = shalt.err (!%p546_p3)
}
 0x32e   :  { %403 = dma.vmem_to_hbm [thread:$0]  %s398_s21, 128, %s658_s3, [#allocation4], %s558_s24, %s558_s24, %s559_s25  }
 0x32f   :  { %554 = dma.done.wait [#allocation4], 128  }
 0x330   :  { %555 = vsyncadd [#allocation4], 4294967168 }
 0x331   :  { %407 = vsyncpa [#allocation3], 1 }
 0x332   :  { %408 = vsyncpa [#allocation6], 1 }
 0x333   :  { %409 = vsyncpa [#allocation4], 1 }

</bundles_post_ra>
